<compile_context>
chip_gen: v7x
topology: tpu7x:2x2x1
jax: 0.10.0
libtpu: 0.0.40
codegen_flags: <defaults>
</compile_context>

<pallas_src>
import functools
import math

import jax
import jax.numpy as jnp
import numpy as np
from jax.experimental import pallas as pl
from jax.experimental.pallas import tpu as pltpu

IMPOSSIBLE = -10000.0


# ----------------------------------------------------------------------------
# Fused kernel: fc (emissions) + Viterbi forward + backtrack, all in vregs
# ----------------------------------------------------------------------------
def crf_viterbi_kernel(feat_ref, wt_ref, b_ref, transT_ref, trans_stop_ref,
                       score_ref, path_ref,
                       *, seq_len, tp_sub, tp_lane, start_idx):
    L = seq_len
    f32 = jnp.float32

    # --- fused fc layer: emissions = features @ W^T + b, stays on-chip ---------
    feat = feat_ref[0]                                                    # (L, C)
    emis = jnp.dot(feat, wt_ref[...],
                   preferred_element_type=f32) + b_ref[...]               # (L, TP_LANE)

    transT = transT_ref[...]              # (TP_SUB, TP_LANE): transT[j, i] = trans[i, j]

    lane = jax.lax.broadcasted_iota(jnp.int32, (1, tp_lane), 1)           # new-tag id on lanes
    sub = jax.lax.broadcasted_iota(jnp.int32, (tp_sub, 1), 0)             # prev-tag id on sublanes
    row_ids = jax.lax.broadcasted_iota(jnp.int32, (tp_sub, tp_lane), 0)
    eye = (jax.lax.broadcasted_iota(jnp.int32, (tp_sub, tp_lane), 0) ==
           jax.lax.broadcasted_iota(jnp.int32, (tp_sub, tp_lane), 1))     # one-hot relayout mask

    # --- init: only START has score 0, everything else IMPOSSIBLE --------------
    fv_col = jnp.where(sub == start_idx, f32(0.0), f32(IMPOSSIBLE))       # (TP_SUB, 1)

    # --- Viterbi forward recursion (static L -> fully unrolled) -----------------
    # accT[j, i] = fv[j] + trans[i, j]; reduce over previous tag j (8 sublanes).
    bp_rows = []
    fv = None
    for t in range(L):
        accT = fv_col + transT                                            # (TP_SUB, TP_LANE)
        best = jnp.max(accT, axis=0, keepdims=True)                       # (1, TP_LANE)
        bp = jnp.min(jnp.where(accT == best, row_ids, tp_sub),
                     axis=0, keepdims=True).astype(jnp.int32)             # argmax_j, first-index tie-break
        bp_rows.append(bp)
        fv = best + emis[t:t + 1, :]                                      # (1, TP_LANE)
        if t + 1 < L:
            # row -> column relayout for the next step (masked lane-reduce, 1 vreg)
            fv_col = jnp.sum(jnp.where(eye, fv, f32(0.0)),
                             axis=1, keepdims=True)                       # (TP_SUB, 1)

    # --- terminal transition into STOP ------------------------------------------
    terminal = fv + trans_stop_ref[...]                                   # (1, TP_LANE)
    score = jnp.max(terminal, axis=1, keepdims=True)                      # (1, 1)
    best_tag = jnp.min(jnp.where(terminal == score, lane, tp_lane),
                       axis=1, keepdims=True).astype(jnp.int32)           # (1, 1)

    # --- backtrack: vectorized one-hot gather (1 vreg per step) -----------------
    pos = jax.lax.broadcasted_iota(jnp.int32, (1, tp_lane), 1)
    path = jnp.zeros((1, tp_lane), jnp.int32)
    cur = best_tag
    for t in range(L - 1, -1, -1):
        path = jnp.where(pos == t, cur, path)                             # path[t] = cur tag
        cur = jnp.sum(jnp.where(lane == cur, bp_rows[t], 0),
                      axis=1, keepdims=True)                              # cur = bps[t][cur]

    # lane-dense (1, 128) stores
    score_ref[0] = jnp.broadcast_to(score, (1, tp_lane))
    path_ref[0] = path


# ----------------------------------------------------------------------------
# Parameter construction / one-time padding (kept out of the per-call hot path)
# ----------------------------------------------------------------------------
def init_crf_params(key, in_features, num_tags):
    """Mirror of PyTorch CRF.__init__ (num_tags excludes START/STOP)."""
    T = num_tags + 2
    start_idx, stop_idx = T - 2, T - 1
    kw, kb, kt = jax.random.split(key, 3)
    bound = 1.0 / math.sqrt(in_features)
    W = jax.random.uniform(kw, (T, in_features), jnp.float32, -bound, bound)
    b = jax.random.uniform(kb, (T,), jnp.float32, -bound, bound)
    trans = jax.random.normal(kt, (T, T), jnp.float32)
    trans = trans.at[start_idx, :].set(IMPOSSIBLE)
    trans = trans.at[:, stop_idx].set(IMPOSSIBLE)
    return W, b, trans


def prepare_crf_params(W, b, transitions):
    """One-time: pre-transpose W and transitions, pad tag axes.

    * new-tag axis padded to 128 lanes (lane-dense), prev-tag axis padded only to 8 sublanes.
    * padded tags get IMPOSSIBLE emissions/transitions so they can never win an argmax.
    """
    T, C = W.shape
    tp_lane = ((T + 127) // 128) * 128
    tp_sub = ((T + 7) // 8) * 8
    stop_idx = T - 1
    wt_p = jnp.zeros((C, tp_lane), jnp.float32).at[:, :T].set(W.T.astype(jnp.float32))
    b_p = jnp.full((1, tp_lane), IMPOSSIBLE, jnp.float32).at[0, :T].set(b.astype(jnp.float32))
    transT_p = jnp.full((tp_sub, tp_lane), IMPOSSIBLE, jnp.float32).at[:T, :T].set(
        transitions.T.astype(jnp.float32))                 # [prev j (sublane), new i (lane)]
    trans_stop_p = jnp.full((1, tp_lane), IMPOSSIBLE, jnp.float32).at[0, :T].set(
        transitions[stop_idx, :].astype(jnp.float32))
    return wt_p, b_p, transT_p, trans_stop_p, T


@functools.partial(jax.jit, static_argnums=(5,))
def crf_forward(features, wt_p, b_p, transT_p, trans_stop_p, num_tags_total):
    """Batched fused fc + Viterbi decode.

    features: (B, L, C) f32 -> (scores (B,), paths (B, L) int32)."""
    B, L, C = features.shape
    tp_sub, tp_lane = transT_p.shape
    kernel = functools.partial(
        crf_viterbi_kernel, seq_len=L, tp_sub=tp_sub, tp_lane=tp_lane,
        start_idx=num_tags_total - 2)
    scores, paths = pl.pallas_call(
        kernel,
        out_shape=(jax.ShapeDtypeStruct((B, 1, tp_lane), jnp.float32),
                   jax.ShapeDtypeStruct((B, 1, tp_lane), jnp.int32)),
        grid=(B,),
        in_specs=[
            pl.BlockSpec((1, L, C), lambda bi: (bi, 0, 0)),          # per-sequence features
            pl.BlockSpec((C, tp_lane), lambda bi: (0, 0)),           # W^T (fetched once)
            pl.BlockSpec((1, tp_lane), lambda bi: (0, 0)),           # bias
            pl.BlockSpec((tp_sub, tp_lane), lambda bi: (0, 0)),      # transitions^T
            pl.BlockSpec((1, tp_lane), lambda bi: (0, 0)),           # transitions[stop, :]
        ],
        out_specs=(pl.BlockSpec((1, 1, tp_lane), lambda bi: (bi, 0, 0)),
                   pl.BlockSpec((1, 1, tp_lane), lambda bi: (bi, 0, 0))),
        compiler_params=pltpu.CompilerParams(
            dimension_semantics=("parallel",)),
    )(features.astype(jnp.float32), wt_p, b_p, transT_p, trans_stop_p)
    return scores[:, 0, 0], paths[:, 0, :L]


def crf_module_forward(features, W, b, transitions, prepared=None):
    """Matches CRF.forward's return signature: (best_score, best_path, transitions).

    Accepts a single sequence (L, C) like the PyTorch module, or a batch (B, L, C)."""
    if prepared is None:
        prepared = prepare_crf_params(W, b, transitions)
    wt_p, b_p, transT_p, trans_stop_p, T = prepared
    single = features.ndim == 2
    feats = features[None] if single else features
    scores, paths = crf_forward(feats, wt_p, b_p, transT_p, trans_stop_p, T)
    if single:
        return scores[0], paths[0], transitions
    return scores, paths, transitions


# ----------------------------------------------------------------------------
# Pure-JAX reference of the PyTorch module (for a light correctness check)
# ----------------------------------------------------------------------------
def crf_forward_reference(features, W, b, transitions):
    T = transitions.shape[0]
    start_idx, stop_idx = T - 2, T - 1
    L = features.shape[0]
    emis = jnp.dot(features, W.T) + b
    fv = jnp.full((T,), IMPOSSIBLE, jnp.float32).at[start_idx].set(0.0)
    bps = []
    for t in range(L):
        acc = fv[None, :] + transitions          # acc[i, j] = fv[j] + trans[i, j]
        bps.append(jnp.argmax(acc, axis=1))
        fv = jnp.max(acc, axis=1) + emis[t]
    terminal = fv + transitions[stop_idx]
    score = jnp.max(terminal)
    tag = jnp.argmax(terminal)
    path = []
    for t in range(L - 1, -1, -1):
        path.append(tag)
        tag = bps[t][tag]
    path.reverse()
    return score, jnp.stack(path).astype(jnp.int32)


if __name__ == "__main__":
    B, L, C, NUM_TAGS = 4, 8, 32, 5   # batch, seq len, in_features, tags (excl. START/STOP)

    root = jax.random.PRNGKey(0)
    kp, kf = jax.random.split(root)
    W, b, transitions = init_crf_params(kp, C, NUM_TAGS)
    features = jax.random.normal(kf, (B, L, C), jnp.float32)

    prepared = prepare_crf_params(W, b, transitions)      # one-time, outside hot path
    scores, paths, trans_out = crf_module_forward(features, W, b, transitions, prepared)
    scores, paths = jax.block_until_ready((scores, paths))

    # correctness check vs a pure-JAX mirror of the PyTorch forward, per sequence
    for i in range(B):
        ref_score, ref_path = crf_forward_reference(features[i], W, b, transitions)
        np.testing.assert_allclose(np.asarray(scores[i]), np.asarray(ref_score),
                                   rtol=1e-3, atol=1e-3)
        assert np.array_equal(np.asarray(paths[i]), np.asarray(ref_path)), \
            (i, paths[i], ref_path)

    # single-sequence call matches the PyTorch module signature exactly
    s0, p0, _ = crf_module_forward(features[0], W, b, transitions, prepared)
    s0, p0 = jax.block_until_ready((s0, p0))
    assert p0.shape == (L,) and p0.dtype == jnp.int32
    assert trans_out.shape == (NUM_TAGS + 2, NUM_TAGS + 2)

    print("KERNEL_OK")
</pallas_src>

<mosaic_0001>
module attributes {stable_mosaic.version = 11 : i64} {
  func.func @crf_viterbi_kernel(%arg0: i32, %arg1: memref<1x8x32xf32, #tpu.memory_space<vmem>>, %arg2: memref<32x128xf32, #tpu.memory_space<vmem>>, %arg3: memref<1x128xf32, #tpu.memory_space<vmem>>, %arg4: memref<8x128xf32, #tpu.memory_space<vmem>>, %arg5: memref<1x128xf32, #tpu.memory_space<vmem>>, %arg6: memref<1x1x128xf32, #tpu.memory_space<vmem>>, %arg7: memref<1x1x128xi32, #tpu.memory_space<vmem>>) attributes {dimension_semantics = [#tpu.dimension_semantics<parallel>], iteration_bounds = array<i64: 4>, scalar_prefetch = 0 : i64, scratch_operands = 0 : i64, tpu.core_type = #tpu.core_type<tc>, window_params = [{transform_indices = @transform_0, window_bounds = array<i64: 1, 8, 32>}, {pipeline_mode = #tpu.pipeline_mode<synchronous>, transform_indices = @transform_1, window_bounds = array<i64: 32, 128>}, {pipeline_mode = #tpu.pipeline_mode<synchronous>, transform_indices = @transform_2, window_bounds = array<i64: 1, 128>}, {pipeline_mode = #tpu.pipeline_mode<synchronous>, transform_indices = @transform_3, window_bounds = array<i64: 8, 128>}, {pipeline_mode = #tpu.pipeline_mode<synchronous>, transform_indices = @transform_4, window_bounds = array<i64: 1, 128>}, {transform_indices = @transform_5, window_bounds = array<i64: 1, 1, 128>}, {transform_indices = @transform_6, window_bounds = array<i64: 1, 1, 128>}]} {
    %c0 = arith.constant 0 : index
    %c0_0 = arith.constant 0 : index
    %c0_1 = arith.constant 0 : index
    %0 = vector.load %arg1[%c0, %c0_0, %c0_1] : memref<1x8x32xf32, #tpu.memory_space<vmem>>, vector<1x8x32xf32>
    %1 = vector.shape_cast %0 : vector<1x8x32xf32> to vector<8x32xf32>
    %c0_2 = arith.constant 0 : index
    %c0_3 = arith.constant 0 : index
    %2 = vector.load %arg2[%c0_2, %c0_3] : memref<32x128xf32, #tpu.memory_space<vmem>>, vector<32x128xf32>
    %cst = arith.constant dense<0.000000e+00> : vector<8x128xf32>
    %3 = tpu.matmul %1, %2, %cst {dimension_numbers = #tpu.dot_dimension_numbers<[1], [0], [0], [1], [0, 0, 1, 1], [], []>} : vector<8x32xf32>, vector<32x128xf32>, vector<8x128xf32> -> vector<8x128xf32>
    %c0_4 = arith.constant 0 : index
    %c0_5 = arith.constant 0 : index
    %4 = vector.load %arg3[%c0_4, %c0_5] : memref<1x128xf32, #tpu.memory_space<vmem>>, vector<1x128xf32>
    %5 = vector.broadcast %4 : vector<1x128xf32> to vector<8x128xf32>
    %6 = arith.addf %3, %5 : vector<8x128xf32>
    %c0_6 = arith.constant 0 : index
    %c0_7 = arith.constant 0 : index
    %7 = vector.load %arg4[%c0_6, %c0_7] : memref<8x128xf32, #tpu.memory_space<vmem>>, vector<8x128xf32>
    %8 = tpu.iota {dimensions = array<i32: 1>} : vector<1x128xi32>
    %9 = tpu.iota {dimensions = array<i32: 0>} : vector<8x1xi32>
    %10 = tpu.iota {dimensions = array<i32: 0>} : vector<8x128xi32>
    %11 = tpu.iota {dimensions = array<i32: 0>} : vector<8x128xi32>
    %12 = tpu.iota {dimensions = array<i32: 1>} : vector<8x128xi32>
    %13 = arith.cmpi eq, %11, %12 : vector<8x128xi32>
    %c5_i32 = arith.constant 5 : i32
    %14 = vector.broadcast %c5_i32 : i32 to vector<8x1xi32>
    %15 = arith.cmpi eq, %9, %14 : vector<8x1xi32>
    %cst_8 = arith.constant 0.000000e+00 : f32
    %cst_9 = arith.constant -1.000000e+04 : f32
    %16 = vector.broadcast %cst_8 : f32 to vector<8x1xf32>
    %17 = vector.broadcast %cst_9 : f32 to vector<8x1xf32>
    %18 = arith.select %15, %16, %17 : vector<8x1xi1>, vector<8x1xf32>
    %19 = vector.broadcast %18 : vector<8x1xf32> to vector<8x128xf32>
    %20 = arith.addf %19, %7 : vector<8x128xf32>
    %cst_10 = arith.constant dense<0xFF800000> : vector<128xf32>
    %21 = vector.multi_reduction <maximumf>, %20, %cst_10 [0] : vector<8x128xf32> to vector<128xf32>
    %22 = vector.shape_cast %21 : vector<128xf32> to vector<1x128xf32>
    %23 = vector.extract_strided_slice %6 {offsets = [0, 0], sizes = [1, 128], strides = [1, 1]} : vector<8x128xf32> to vector<1x128xf32>
    %24 = arith.addf %22, %23 : vector<1x128xf32>
    %cst_11 = arith.constant 0.000000e+00 : f32
    %25 = vector.shape_cast %24 : vector<1x128xf32> to vector<1x128xf32>
    %26 = vector.broadcast %25 : vector<1x128xf32> to vector<8x128xf32>
    %27 = vector.broadcast %cst_11 : f32 to vector<8x128xf32>
    %28 = arith.select %13, %26, %27 : vector<8x128xi1>, vector<8x128xf32>
    %cst_12 = arith.constant dense<0.000000e+00> : vector<8xf32>
    %29 = vector.multi_reduction <add>, %28, %cst_12 [1] : vector<8x128xf32> to vector<8xf32>
    %30 = vector.shape_cast %29 : vector<8xf32> to vector<8x1xf32>
    %31 = vector.broadcast %30 : vector<8x1xf32> to vector<8x128xf32>
    %32 = arith.addf %31, %7 : vector<8x128xf32>
    %cst_13 = arith.constant dense<0xFF800000> : vector<128xf32>
    %33 = vector.multi_reduction <maximumf>, %32, %cst_13 [0] : vector<8x128xf32> to vector<128xf32>
    %34 = vector.shape_cast %33 : vector<128xf32> to vector<1x128xf32>
    %35 = vector.broadcast %34 : vector<1x128xf32> to vector<8x128xf32>
    %36 = arith.cmpf oeq, %32, %35 : vector<8x128xf32>
    %c8_i32 = arith.constant 8 : i32
    %37 = vector.broadcast %c8_i32 : i32 to vector<8x128xi32>
    %38 = arith.select %36, %10, %37 : vector<8x128xi1>, vector<8x128xi32>
    %cst_14 = arith.constant dense<2147483647> : vector<128xi32>
    %39 = vector.multi_reduction <minsi>, %38, %cst_14 [0] : vector<8x128xi32> to vector<128xi32>
    %40 = vector.shape_cast %39 : vector<128xi32> to vector<1x128xi32>
    %41 = vector.extract_strided_slice %6 {offsets = [1, 0], sizes = [1, 128], strides = [1, 1]} : vector<8x128xf32> to vector<1x128xf32>
    %42 = arith.addf %34, %41 : vector<1x128xf32>
    %cst_15 = arith.constant 0.000000e+00 : f32
    %43 = vector.shape_cast %42 : vector<1x128xf32> to vector<1x128xf32>
    %44 = vector.broadcast %43 : vector<1x128xf32> to vector<8x128xf32>
    %45 = vector.broadcast %cst_15 : f32 to vector<8x128xf32>
    %46 = arith.select %13, %44, %45 : vector<8x128xi1>, vector<8x128xf32>
    %cst_16 = arith.constant dense<0.000000e+00> : vector<8xf32>
    %47 = vector.multi_reduction <add>, %46, %cst_16 [1] : vector<8x128xf32> to vector<8xf32>
    %48 = vector.shape_cast %47 : vector<8xf32> to vector<8x1xf32>
    %49 = vector.broadcast %48 : vector<8x1xf32> to vector<8x128xf32>
    %50 = arith.addf %49, %7 : vector<8x128xf32>
    %cst_17 = arith.constant dense<0xFF800000> : vector<128xf32>
    %51 = vector.multi_reduction <maximumf>, %50, %cst_17 [0] : vector<8x128xf32> to vector<128xf32>
    %52 = vector.shape_cast %51 : vector<128xf32> to vector<1x128xf32>
    %53 = vector.broadcast %52 : vector<1x128xf32> to vector<8x128xf32>
    %54 = arith.cmpf oeq, %50, %53 : vector<8x128xf32>
    %c8_i32_18 = arith.constant 8 : i32
    %55 = vector.broadcast %c8_i32_18 : i32 to vector<8x128xi32>
    %56 = arith.select %54, %10, %55 : vector<8x128xi1>, vector<8x128xi32>
    %cst_19 = arith.constant dense<2147483647> : vector<128xi32>
    %57 = vector.multi_reduction <minsi>, %56, %cst_19 [0] : vector<8x128xi32> to vector<128xi32>
    %58 = vector.shape_cast %57 : vector<128xi32> to vector<1x128xi32>
    %59 = vector.extract_strided_slice %6 {offsets = [2, 0], sizes = [1, 128], strides = [1, 1]} : vector<8x128xf32> to vector<1x128xf32>
    %60 = arith.addf %52, %59 : vector<1x128xf32>
    %cst_20 = arith.constant 0.000000e+00 : f32
    %61 = vector.shape_cast %60 : vector<1x128xf32> to vector<1x128xf32>
    %62 = vector.broadcast %61 : vector<1x128xf32> to vector<8x128xf32>
    %63 = vector.broadcast %cst_20 : f32 to vector<8x128xf32>
    %64 = arith.select %13, %62, %63 : vector<8x128xi1>, vector<8x128xf32>
    %cst_21 = arith.constant dense<0.000000e+00> : vector<8xf32>
    %65 = vector.multi_reduction <add>, %64, %cst_21 [1] : vector<8x128xf32> to vector<8xf32>
    %66 = vector.shape_cast %65 : vector<8xf32> to vector<8x1xf32>
    %67 = vector.broadcast %66 : vector<8x1xf32> to vector<8x128xf32>
    %68 = arith.addf %67, %7 : vector<8x128xf32>
    %cst_22 = arith.constant dense<0xFF800000> : vector<128xf32>
    %69 = vector.multi_reduction <maximumf>, %68, %cst_22 [0] : vector<8x128xf32> to vector<128xf32>
    %70 = vector.shape_cast %69 : vector<128xf32> to vector<1x128xf32>
    %71 = vector.broadcast %70 : vector<1x128xf32> to vector<8x128xf32>
    %72 = arith.cmpf oeq, %68, %71 : vector<8x128xf32>
    %c8_i32_23 = arith.constant 8 : i32
    %73 = vector.broadcast %c8_i32_23 : i32 to vector<8x128xi32>
    %74 = arith.select %72, %10, %73 : vector<8x128xi1>, vector<8x128xi32>
    %cst_24 = arith.constant dense<2147483647> : vector<128xi32>
    %75 = vector.multi_reduction <minsi>, %74, %cst_24 [0] : vector<8x128xi32> to vector<128xi32>
    %76 = vector.shape_cast %75 : vector<128xi32> to vector<1x128xi32>
    %77 = vector.extract_strided_slice %6 {offsets = [3, 0], sizes = [1, 128], strides = [1, 1]} : vector<8x128xf32> to vector<1x128xf32>
    %78 = arith.addf %70, %77 : vector<1x128xf32>
    %cst_25 = arith.constant 0.000000e+00 : f32
    %79 = vector.shape_cast %78 : vector<1x128xf32> to vector<1x128xf32>
    %80 = vector.broadcast %79 : vector<1x128xf32> to vector<8x128xf32>
    %81 = vector.broadcast %cst_25 : f32 to vector<8x128xf32>
    %82 = arith.select %13, %80, %81 : vector<8x128xi1>, vector<8x128xf32>
    %cst_26 = arith.constant dense<0.000000e+00> : vector<8xf32>
    %83 = vector.multi_reduction <add>, %82, %cst_26 [1] : vector<8x128xf32> to vector<8xf32>
    %84 = vector.shape_cast %83 : vector<8xf32> to vector<8x1xf32>
    %85 = vector.broadcast %84 : vector<8x1xf32> to vector<8x128xf32>
    %86 = arith.addf %85, %7 : vector<8x128xf32>
    %cst_27 = arith.constant dense<0xFF800000> : vector<128xf32>
    %87 = vector.multi_reduction <maximumf>, %86, %cst_27 [0] : vector<8x128xf32> to vector<128xf32>
    %88 = vector.shape_cast %87 : vector<128xf32> to vector<1x128xf32>
    %89 = vector.broadcast %88 : vector<1x128xf32> to vector<8x128xf32>
    %90 = arith.cmpf oeq, %86, %89 : vector<8x128xf32>
    %c8_i32_28 = arith.constant 8 : i32
    %91 = vector.broadcast %c8_i32_28 : i32 to vector<8x128xi32>
    %92 = arith.select %90, %10, %91 : vector<8x128xi1>, vector<8x128xi32>
    %cst_29 = arith.constant dense<2147483647> : vector<128xi32>
    %93 = vector.multi_reduction <minsi>, %92, %cst_29 [0] : vector<8x128xi32> to vector<128xi32>
    %94 = vector.shape_cast %93 : vector<128xi32> to vector<1x128xi32>
    %95 = vector.extract_strided_slice %6 {offsets = [4, 0], sizes = [1, 128], strides = [1, 1]} : vector<8x128xf32> to vector<1x128xf32>
    %96 = arith.addf %88, %95 : vector<1x128xf32>
    %cst_30 = arith.constant 0.000000e+00 : f32
    %97 = vector.shape_cast %96 : vector<1x128xf32> to vector<1x128xf32>
    %98 = vector.broadcast %97 : vector<1x128xf32> to vector<8x128xf32>
    %99 = vector.broadcast %cst_30 : f32 to vector<8x128xf32>
    %100 = arith.select %13, %98, %99 : vector<8x128xi1>, vector<8x128xf32>
    %cst_31 = arith.constant dense<0.000000e+00> : vector<8xf32>
    %101 = vector.multi_reduction <add>, %100, %cst_31 [1] : vector<8x128xf32> to vector<8xf32>
    %102 = vector.shape_cast %101 : vector<8xf32> to vector<8x1xf32>
    %103 = vector.broadcast %102 : vector<8x1xf32> to vector<8x128xf32>
    %104 = arith.addf %103, %7 : vector<8x128xf32>
    %cst_32 = arith.constant dense<0xFF800000> : vector<128xf32>
    %105 = vector.multi_reduction <maximumf>, %104, %cst_32 [0] : vector<8x128xf32> to vector<128xf32>
    %106 = vector.shape_cast %105 : vector<128xf32> to vector<1x128xf32>
    %107 = vector.broadcast %106 : vector<1x128xf32> to vector<8x128xf32>
    %108 = arith.cmpf oeq, %104, %107 : vector<8x128xf32>
    %c8_i32_33 = arith.constant 8 : i32
    %109 = vector.broadcast %c8_i32_33 : i32 to vector<8x128xi32>
    %110 = arith.select %108, %10, %109 : vector<8x128xi1>, vector<8x128xi32>
    %cst_34 = arith.constant dense<2147483647> : vector<128xi32>
    %111 = vector.multi_reduction <minsi>, %110, %cst_34 [0] : vector<8x128xi32> to vector<128xi32>
    %112 = vector.shape_cast %111 : vector<128xi32> to vector<1x128xi32>
    %113 = vector.extract_strided_slice %6 {offsets = [5, 0], sizes = [1, 128], strides = [1, 1]} : vector<8x128xf32> to vector<1x128xf32>
    %114 = arith.addf %106, %113 : vector<1x128xf32>
    %cst_35 = arith.constant 0.000000e+00 : f32
    %115 = vector.shape_cast %114 : vector<1x128xf32> to vector<1x128xf32>
    %116 = vector.broadcast %115 : vector<1x128xf32> to vector<8x128xf32>
    %117 = vector.broadcast %cst_35 : f32 to vector<8x128xf32>
    %118 = arith.select %13, %116, %117 : vector<8x128xi1>, vector<8x128xf32>
    %cst_36 = arith.constant dense<0.000000e+00> : vector<8xf32>
    %119 = vector.multi_reduction <add>, %118, %cst_36 [1] : vector<8x128xf32> to vector<8xf32>
    %120 = vector.shape_cast %119 : vector<8xf32> to vector<8x1xf32>
    %121 = vector.broadcast %120 : vector<8x1xf32> to vector<8x128xf32>
    %122 = arith.addf %121, %7 : vector<8x128xf32>
    %cst_37 = arith.constant dense<0xFF800000> : vector<128xf32>
    %123 = vector.multi_reduction <maximumf>, %122, %cst_37 [0] : vector<8x128xf32> to vector<128xf32>
    %124 = vector.shape_cast %123 : vector<128xf32> to vector<1x128xf32>
    %125 = vector.broadcast %124 : vector<1x128xf32> to vector<8x128xf32>
    %126 = arith.cmpf oeq, %122, %125 : vector<8x128xf32>
    %c8_i32_38 = arith.constant 8 : i32
    %127 = vector.broadcast %c8_i32_38 : i32 to vector<8x128xi32>
    %128 = arith.select %126, %10, %127 : vector<8x128xi1>, vector<8x128xi32>
    %cst_39 = arith.constant dense<2147483647> : vector<128xi32>
    %129 = vector.multi_reduction <minsi>, %128, %cst_39 [0] : vector<8x128xi32> to vector<128xi32>
    %130 = vector.shape_cast %129 : vector<128xi32> to vector<1x128xi32>
    %131 = vector.extract_strided_slice %6 {offsets = [6, 0], sizes = [1, 128], strides = [1, 1]} : vector<8x128xf32> to vector<1x128xf32>
    %132 = arith.addf %124, %131 : vector<1x128xf32>
    %cst_40 = arith.constant 0.000000e+00 : f32
    %133 = vector.shape_cast %132 : vector<1x128xf32> to vector<1x128xf32>
    %134 = vector.broadcast %133 : vector<1x128xf32> to vector<8x128xf32>
    %135 = vector.broadcast %cst_40 : f32 to vector<8x128xf32>
    %136 = arith.select %13, %134, %135 : vector<8x128xi1>, vector<8x128xf32>
    %cst_41 = arith.constant dense<0.000000e+00> : vector<8xf32>
    %137 = vector.multi_reduction <add>, %136, %cst_41 [1] : vector<8x128xf32> to vector<8xf32>
    %138 = vector.shape_cast %137 : vector<8xf32> to vector<8x1xf32>
    %139 = vector.broadcast %138 : vector<8x1xf32> to vector<8x128xf32>
    %140 = arith.addf %139, %7 : vector<8x128xf32>
    %cst_42 = arith.constant dense<0xFF800000> : vector<128xf32>
    %141 = vector.multi_reduction <maximumf>, %140, %cst_42 [0] : vector<8x128xf32> to vector<128xf32>
    %142 = vector.shape_cast %141 : vector<128xf32> to vector<1x128xf32>
    %143 = vector.broadcast %142 : vector<1x128xf32> to vector<8x128xf32>
    %144 = arith.cmpf oeq, %140, %143 : vector<8x128xf32>
    %c8_i32_43 = arith.constant 8 : i32
    %145 = vector.broadcast %c8_i32_43 : i32 to vector<8x128xi32>
    %146 = arith.select %144, %10, %145 : vector<8x128xi1>, vector<8x128xi32>
    %cst_44 = arith.constant dense<2147483647> : vector<128xi32>
    %147 = vector.multi_reduction <minsi>, %146, %cst_44 [0] : vector<8x128xi32> to vector<128xi32>
    %148 = vector.shape_cast %147 : vector<128xi32> to vector<1x128xi32>
    %149 = vector.extract_strided_slice %6 {offsets = [7, 0], sizes = [1, 128], strides = [1, 1]} : vector<8x128xf32> to vector<1x128xf32>
    %150 = arith.addf %142, %149 : vector<1x128xf32>
    %c0_45 = arith.constant 0 : index
    %c0_46 = arith.constant 0 : index
    %151 = vector.load %arg5[%c0_45, %c0_46] : memref<1x128xf32, #tpu.memory_space<vmem>>, vector<1x128xf32>
    %152 = arith.addf %150, %151 : vector<1x128xf32>
    %cst_47 = arith.constant dense<0xFF800000> : vector<1xf32>
    %153 = vector.multi_reduction <maximumf>, %152, %cst_47 [1] : vector<1x128xf32> to vector<1xf32>
    %154 = vector.shape_cast %153 : vector<1xf32> to vector<1x1xf32>
    %155 = vector.broadcast %154 : vector<1x1xf32> to vector<1x128xf32>
    %156 = arith.cmpf oeq, %152, %155 : vector<1x128xf32>
    %c128_i32 = arith.constant 128 : i32
    %157 = vector.broadcast %c128_i32 : i32 to vector<1x128xi32>
    %158 = arith.select %156, %8, %157 : vector<1x128xi1>, vector<1x128xi32>
    %cst_48 = arith.constant dense<2147483647> : vector<1xi32>
    %159 = vector.multi_reduction <minsi>, %158, %cst_48 [1] : vector<1x128xi32> to vector<1xi32>
    %160 = vector.shape_cast %159 : vector<1xi32> to vector<1x1xi32>
    %161 = tpu.iota {dimensions = array<i32: 1>} : vector<1x128xi32>
    %c0_i32 = arith.constant 0 : i32
    %162 = vector.broadcast %c0_i32 : i32 to vector<1x128xi32>
    %c7_i32 = arith.constant 7 : i32
    %163 = vector.broadcast %c7_i32 : i32 to vector<1x128xi32>
    %164 = arith.cmpi eq, %161, %163 : vector<1x128xi32>
    %165 = vector.shape_cast %160 : vector<1x1xi32> to vector<1x1xi32>
    %166 = vector.broadcast %165 : vector<1x1xi32> to vector<1x128xi32>
    %167 = arith.select %164, %166, %162 : vector<1x128xi1>, vector<1x128xi32>
    %168 = vector.broadcast %160 : vector<1x1xi32> to vector<1x128xi32>
    %169 = arith.cmpi eq, %8, %168 : vector<1x128xi32>
    %c0_i32_49 = arith.constant 0 : i32
    %170 = vector.broadcast %c0_i32_49 : i32 to vector<1x128xi32>
    %171 = arith.select %169, %148, %170 : vector<1x128xi1>, vector<1x128xi32>
    %cst_50 = arith.constant dense<0> : vector<1xi32>
    %172 = vector.multi_reduction <add>, %171, %cst_50 [1] : vector<1x128xi32> to vector<1xi32>
    %173 = vector.shape_cast %172 : vector<1xi32> to vector<1x1xi32>
    %c6_i32 = arith.constant 6 : i32
    %174 = vector.broadcast %c6_i32 : i32 to vector<1x128xi32>
    %175 = arith.cmpi eq, %161, %174 : vector<1x128xi32>
    %176 = vector.shape_cast %173 : vector<1x1xi32> to vector<1x1xi32>
    %177 = vector.broadcast %176 : vector<1x1xi32> to vector<1x128xi32>
    %178 = arith.select %175, %177, %167 : vector<1x128xi1>, vector<1x128xi32>
    %179 = vector.broadcast %173 : vector<1x1xi32> to vector<1x128xi32>
    %180 = arith.cmpi eq, %8, %179 : vector<1x128xi32>
    %c0_i32_51 = arith.constant 0 : i32
    %181 = vector.broadcast %c0_i32_51 : i32 to vector<1x128xi32>
    %182 = arith.select %180, %130, %181 : vector<1x128xi1>, vector<1x128xi32>
    %cst_52 = arith.constant dense<0> : vector<1xi32>
    %183 = vector.multi_reduction <add>, %182, %cst_52 [1] : vector<1x128xi32> to vector<1xi32>
    %184 = vector.shape_cast %183 : vector<1xi32> to vector<1x1xi32>
    %c5_i32_53 = arith.constant 5 : i32
    %185 = vector.broadcast %c5_i32_53 : i32 to vector<1x128xi32>
    %186 = arith.cmpi eq, %161, %185 : vector<1x128xi32>
    %187 = vector.shape_cast %184 : vector<1x1xi32> to vector<1x1xi32>
    %188 = vector.broadcast %187 : vector<1x1xi32> to vector<1x128xi32>
    %189 = arith.select %186, %188, %178 : vector<1x128xi1>, vector<1x128xi32>
    %190 = vector.broadcast %184 : vector<1x1xi32> to vector<1x128xi32>
    %191 = arith.cmpi eq, %8, %190 : vector<1x128xi32>
    %c0_i32_54 = arith.constant 0 : i32
    %192 = vector.broadcast %c0_i32_54 : i32 to vector<1x128xi32>
    %193 = arith.select %191, %112, %192 : vector<1x128xi1>, vector<1x128xi32>
    %cst_55 = arith.constant dense<0> : vector<1xi32>
    %194 = vector.multi_reduction <add>, %193, %cst_55 [1] : vector<1x128xi32> to vector<1xi32>
    %195 = vector.shape_cast %194 : vector<1xi32> to vector<1x1xi32>
    %c4_i32 = arith.constant 4 : i32
    %196 = vector.broadcast %c4_i32 : i32 to vector<1x128xi32>
    %197 = arith.cmpi eq, %161, %196 : vector<1x128xi32>
    %198 = vector.shape_cast %195 : vector<1x1xi32> to vector<1x1xi32>
    %199 = vector.broadcast %198 : vector<1x1xi32> to vector<1x128xi32>
    %200 = arith.select %197, %199, %189 : vector<1x128xi1>, vector<1x128xi32>
    %201 = vector.broadcast %195 : vector<1x1xi32> to vector<1x128xi32>
    %202 = arith.cmpi eq, %8, %201 : vector<1x128xi32>
    %c0_i32_56 = arith.constant 0 : i32
    %203 = vector.broadcast %c0_i32_56 : i32 to vector<1x128xi32>
    %204 = arith.select %202, %94, %203 : vector<1x128xi1>, vector<1x128xi32>
    %cst_57 = arith.constant dense<0> : vector<1xi32>
    %205 = vector.multi_reduction <add>, %204, %cst_57 [1] : vector<1x128xi32> to vector<1xi32>
    %206 = vector.shape_cast %205 : vector<1xi32> to vector<1x1xi32>
    %c3_i32 = arith.constant 3 : i32
    %207 = vector.broadcast %c3_i32 : i32 to vector<1x128xi32>
    %208 = arith.cmpi eq, %161, %207 : vector<1x128xi32>
    %209 = vector.shape_cast %206 : vector<1x1xi32> to vector<1x1xi32>
    %210 = vector.broadcast %209 : vector<1x1xi32> to vector<1x128xi32>
    %211 = arith.select %208, %210, %200 : vector<1x128xi1>, vector<1x128xi32>
    %212 = vector.broadcast %206 : vector<1x1xi32> to vector<1x128xi32>
    %213 = arith.cmpi eq, %8, %212 : vector<1x128xi32>
    %c0_i32_58 = arith.constant 0 : i32
    %214 = vector.broadcast %c0_i32_58 : i32 to vector<1x128xi32>
    %215 = arith.select %213, %76, %214 : vector<1x128xi1>, vector<1x128xi32>
    %cst_59 = arith.constant dense<0> : vector<1xi32>
    %216 = vector.multi_reduction <add>, %215, %cst_59 [1] : vector<1x128xi32> to vector<1xi32>
    %217 = vector.shape_cast %216 : vector<1xi32> to vector<1x1xi32>
    %c2_i32 = arith.constant 2 : i32
    %218 = vector.broadcast %c2_i32 : i32 to vector<1x128xi32>
    %219 = arith.cmpi eq, %161, %218 : vector<1x128xi32>
    %220 = vector.shape_cast %217 : vector<1x1xi32> to vector<1x1xi32>
    %221 = vector.broadcast %220 : vector<1x1xi32> to vector<1x128xi32>
    %222 = arith.select %219, %221, %211 : vector<1x128xi1>, vector<1x128xi32>
    %223 = vector.broadcast %217 : vector<1x1xi32> to vector<1x128xi32>
    %224 = arith.cmpi eq, %8, %223 : vector<1x128xi32>
    %c0_i32_60 = arith.constant 0 : i32
    %225 = vector.broadcast %c0_i32_60 : i32 to vector<1x128xi32>
    %226 = arith.select %224, %58, %225 : vector<1x128xi1>, vector<1x128xi32>
    %cst_61 = arith.constant dense<0> : vector<1xi32>
    %227 = vector.multi_reduction <add>, %226, %cst_61 [1] : vector<1x128xi32> to vector<1xi32>
    %228 = vector.shape_cast %227 : vector<1xi32> to vector<1x1xi32>
    %c1_i32 = arith.constant 1 : i32
    %229 = vector.broadcast %c1_i32 : i32 to vector<1x128xi32>
    %230 = arith.cmpi eq, %161, %229 : vector<1x128xi32>
    %231 = vector.shape_cast %228 : vector<1x1xi32> to vector<1x1xi32>
    %232 = vector.broadcast %231 : vector<1x1xi32> to vector<1x128xi32>
    %233 = arith.select %230, %232, %222 : vector<1x128xi1>, vector<1x128xi32>
    %234 = vector.broadcast %228 : vector<1x1xi32> to vector<1x128xi32>
    %235 = arith.cmpi eq, %8, %234 : vector<1x128xi32>
    %c0_i32_62 = arith.constant 0 : i32
    %236 = vector.broadcast %c0_i32_62 : i32 to vector<1x128xi32>
    %237 = arith.select %235, %40, %236 : vector<1x128xi1>, vector<1x128xi32>
    %cst_63 = arith.constant dense<0> : vector<1xi32>
    %238 = vector.multi_reduction <add>, %237, %cst_63 [1] : vector<1x128xi32> to vector<1xi32>
    %239 = vector.shape_cast %238 : vector<1xi32> to vector<1x1xi32>
    %c0_i32_64 = arith.constant 0 : i32
    %240 = vector.broadcast %c0_i32_64 : i32 to vector<1x128xi32>
    %241 = arith.cmpi eq, %161, %240 : vector<1x128xi32>
    %242 = vector.shape_cast %239 : vector<1x1xi32> to vector<1x1xi32>
    %243 = vector.broadcast %242 : vector<1x1xi32> to vector<1x128xi32>
    %244 = arith.select %241, %243, %233 : vector<1x128xi1>, vector<1x128xi32>
    %245 = vector.shape_cast %154 : vector<1x1xf32> to vector<1x1xf32>
    %246 = vector.broadcast %245 : vector<1x1xf32> to vector<1x128xf32>
    %c0_65 = arith.constant 0 : index
    %c0_66 = arith.constant 0 : index
    %c0_67 = arith.constant 0 : index
    %247 = vector.load %arg6[%c0_65, %c0_66, %c0_67] : memref<1x1x128xf32, #tpu.memory_space<vmem>>, vector<1x1x128xf32>
    %248 = vector.shape_cast %247 : vector<1x1x128xf32> to vector<1x128xf32>
    %249 = vector.shape_cast %246 : vector<1x128xf32> to vector<1x1x128xf32>
    tpu.vector_store %arg6[%c0_65, %c0_66, %c0_67], %249 {strides = array<i32>} : memref<1x1x128xf32, #tpu.memory_space<vmem>>, vector<1x1x128xf32>,
    %c0_68 = arith.constant 0 : index
    %c0_69 = arith.constant 0 : index
    %c0_70 = arith.constant 0 : index
    %250 = vector.load %arg7[%c0_68, %c0_69, %c0_70] : memref<1x1x128xi32, #tpu.memory_space<vmem>>, vector<1x1x128xi32>
    %251 = vector.shape_cast %250 : vector<1x1x128xi32> to vector<1x128xi32>
    %252 = vector.shape_cast %244 : vector<1x128xi32> to vector<1x1x128xi32>
    tpu.vector_store %arg7[%c0_68, %c0_69, %c0_70], %252 {strides = array<i32>} : memref<1x1x128xi32, #tpu.memory_space<vmem>>, vector<1x1x128xi32>,
    return
  }
  func.func @transform_0(%arg0: i32) -> (i32, i32, i32) {
    %c0_i32 = arith.constant 0 : i32
    %c0_i32_0 = arith.constant 0 : i32
    %c0_i32_1 = arith.constant 0 : i32
    return %arg0, %c0_i32, %c0_i32_0 : i32, i32, i32
  }
  func.func @transform_1(%arg0: i32) -> (i32, i32) {
    %c0_i32 = arith.constant 0 : i32
    %c0_i32_0 = arith.constant 0 : i32
    %c0_i32_1 = arith.constant 0 : i32
    return %c0_i32, %c0_i32_0 : i32, i32
  }
  func.func @transform_2(%arg0: i32) -> (i32, i32) {
    %c0_i32 = arith.constant 0 : i32
    %c0_i32_0 = arith.constant 0 : i32
    %c0_i32_1 = arith.constant 0 : i32
    return %c0_i32, %c0_i32_0 : i32, i32
  }
  func.func @transform_3(%arg0: i32) -> (i32, i32) {
    %c0_i32 = arith.constant 0 : i32
    %c0_i32_0 = arith.constant 0 : i32
    %c0_i32_1 = arith.constant 0 : i32
    return %c0_i32, %c0_i32_0 : i32, i32
  }
  func.func @transform_4(%arg0: i32) -> (i32, i32) {
    %c0_i32 = arith.constant 0 : i32
    %c0_i32_0 = arith.constant 0 : i32
    %c0_i32_1 = arith.constant 0 : i32
    return %c0_i32, %c0_i32_0 : i32, i32
  }
  func.func @transform_5(%arg0: i32) -> (i32, i32, i32) {
    %c0_i32 = arith.constant 0 : i32
    %c0_i32_0 = arith.constant 0 : i32
    %c0_i32_1 = arith.constant 0 : i32
    return %arg0, %c0_i32, %c0_i32_0 : i32, i32, i32
  }
  func.func @transform_6(%arg0: i32) -> (i32, i32, i32) {
    %c0_i32 = arith.constant 0 : i32
    %c0_i32_0 = arith.constant 0 : i32
    %c0_i32_1 = arith.constant 0 : i32
    return %arg0, %c0_i32, %c0_i32_0 : i32, i32, i32
  }
}

</mosaic_0001>

<bundles_post_ra>
// kernel: crf_forward.1
= control target key start
LH: loop header
LB: loop body
LE: loop exit
PB: predicated region body
PF: predicated region fallthrough
CT: control target
= control target key end

     0   :  { %12 = vsyncpa [#allocation3], 0  ;;  %s1473_s0 = inlined_call_operand.hbm [shape: f32[4,8,32], index: 0, kind: input, shape index: {}]   ;;  %s1474_s1 = inlined_call_operand.hbm [shape: f32[32,128], index: 1, kind: input, shape index: {}]   ;;  %s1475_s2 = inlined_call_operand.vmem [shape: f32[1,128], index: 2, kind: input, shape index: {}]   ;;  %s1476_s3 = inlined_call_operand.vmem [shape: f32[8,128], index: 3, kind: input, shape index: {}]   ;;  %s1477_s4 = inlined_call_operand.vmem [shape: f32[1,128], index: 4, kind: input, shape index: {}]   ;;  %s1478_s5 = inlined_call_operand.vmem [shape: f32[4,1,128], index: 5, kind: output, shape index: {0}]   ;;  %s1479_s6 = inlined_call_operand.hbm [shape: s32[4,1,128], index: 6, kind: output, shape index: {1}]  }
   0x1   :  { %14 = vsyncpa [#allocation3 + $0x1], 0 }
   0x2   :  { %15 = vsyncpa [#allocation6], 0 }
   0x3   :  { %16 = vsyncpa [#allocation4], 0 }
   0x4   :  { %18 = vsyncpa [#allocation4 + $0x1], 0  ;;  %s1114_s21 = smov 0   ;;  %s1116_s22 = smov 0  }
   0x5   :  { %s1118_s23 = smov 0   ;;  %s1120_s24 = smov 0  }
   0x6 LB: > { %s1135_s25 = sadd.s32 4294967295, %s1068_s24   ;;  %s840_s26 = sadd.s32 4294967294, %s1068_s24   ;;  %s1068_s24 = sphi %s1120_s24, %s1500_s24   ;;  %s1064_s23 = sphi %s1118_s23, %s1499_s23   ;;  %s1060_s22 = sphi %s1116_s22, %s1498_s22   ;;  %s1056_s21 = sphi %s1114_s21, %s1497_s21  }
   0x7   : > { %p44_p0 = scmp.ne.s32.totalorder %s1060_s22, %s1056_s21  ;;  %p1480_p1 = scmp.eq.s32.totalorder %s1135_s25, 0 }
   0x8   : > { %p184_p3 = scmp.eq.s32.totalorder %s840_s26, 3  ;;  %p841_p5 = scmp.ge.s32.totalorder %s1068_s24, 1 }
   0x9   : > { %p1144_p4 = por %p1480_p1, %p44_p0  ;;  %p191_p7 = scmp.lt.s32.totalorder %s1068_s24, 5 }
   0xa   : > { %p1149_p6 = por %p184_p3, %p44_p0  ;;  %s1070_s30 = smov [#allocation5]  }
   0xb   : > { %s1483_s27 = scalar_select %p1144_p4, 1, 0 }
   0xc   : > { %s1484_s28 = scalar_select %p1149_p6, 1, 0 }
   0xd   : > { %p1154_p8 = pnand %p841_p5, %p191_p7  ;;  %s203_s7 = sshll.u32 %s1070_s30, 4  ;;  %s204_s7 = int_to_ptr.vmem [resolvable:$true] %s203_s7 }
   0xe   : > { %s1167_s9 = sadd.s32 1, %s1068_s24   ;;  %s31_s10 = sadd.s32 1, %s1064_s23 }
   0xf   : > { %s1485_s29 = scalar_select %p1154_p8, 1, 0 }
  0x10   : > { %p885_p9 = pneg %p1154_p8  ;;  %s28_s11 = ssub.s32 %s1068_s24, %s1167_s9 }
  0x11   : > { %s940_s14 = scalar_lea.hbm %s1474_s1, 512 }
  0x12   : > { %p1162_p10 = pnand %p885_p9, %p1480_p1  ;;  %p941_p11 = scmp.ne.s32.totalorder %s1474_s1, %s940_s14 }
  0x13   : > { %p947_p3 = scmp.lt.u32.totalorder %s940_s14, %s1474_s1 }
  0x14   : > { %p942_p12 = pneg %p1162_p10 }
  0x16   : > { %p943_p13 = pnand %p942_p12, %p941_p11 }
  0x18   : > { %p944_p0 = pneg %p943_p13 }
  0x1a   : > { %p949_p5 = pnand %p947_p3, %p944_p0 }
  0x1c   : > { %952 = shalt.err (!%p949_p5)
}
  0x1d   : > { %s953_s19 = scalar_lea.vmem %s204_s7, 512  ;;  %p961_p2 = scmp.lt.s32.totalorder %s204_s7, %s204_s7 }
  0x1e   : > { %p954_p7 = scmp.ne.s32.totalorder %s204_s7, %s953_s19  ;;  %p962_p6 = scmp.lt.s32.totalorder %s953_s19, %s953_s19 }
  0x20   : > { %p956_p9 = pnand %p954_p7, %p942_p12  ;;  %p963_p4 = por %p962_p6, %p961_p2 }
  0x22   : > { %p957_p1 = pneg %p956_p9 }
  0x24   : > { %p964_p8 = pnand %p963_p4, %p957_p1 }
  0x26   : > { %967 = shalt.err (!%p964_p8)
}
  0x27   : > { %s1071_s20 = smov 128   ;;  %s1072_s26 = smov 8  }
  0x28   : > { %888 = dma.hbm_to_vmem [thread:$0]  (!%p1162_p10), %s1474_s1, 512, %s204_s7, [#allocation6], %s1071_s20, %s1071_s20, %s1072_s26  }
  0x29   : > { %p29_p11 = scmp.eq.s32.totalorder %s28_s11, 0  ;;  %p38_p2 = scmp.ne.s32.totalorder %s1064_s23, %s1060_s22 }
  0x2a   : > { %p39_p1 = scmp.eq.s32.totalorder %s1068_s24, 0  ;;  %p898_p4 = scmp.lt.s32.totalorder %s1068_s24, 4 }
  0x2b   : > { %s1193_s13 = scalar_select %p29_p11, %s1064_s23, %s31_s10  }
  0x2c   : > { %p40_p6 = por %p39_p1, %p38_p2  ;;  %p1487_p8 = scmp.eq.s32.totalorder %s1135_s25, 3 }
  0x2d   : > { %s226_s15 = sand.u32 1, %s1064_s23   ;;  %s845_s16 = sshll.u32 %s1068_s24, 7 }
  0x2e   : > { %p1197_p12 = por %p1487_p8, %p38_p2  ;;  %s844_s17 = sshll.u32 %s226_s15, 3 }
  0x2f   : > { %s1206_s19 = scalar_lea.hbm %s1473_s0, %s845_s16  ;;  %s230_s7 = scalar_lea.vmem [#allocation2], %s844_s17 }
  0x30   : > { %s237_s10 = sshll.u32 %s230_s7, 4  ;;  %p1208_p10 = pnand %p898_p4, %p40_p6  ;;  %s1212_s10 = int_to_ptr.vmem [resolvable:$true] %s237_s10 }
  0x31   : > { %s227_s20 = scalar_lea.sflag [#allocation3], %s226_s15  ;;  %s968_s26 = scalar_lea.hbm %s1206_s19, 128 }
  0x32   : > { %p969_p13 = scmp.ne.s32.totalorder %s1206_s19, %s968_s26  ;;  %p970_p0 = pneg %p1208_p10 }
  0x33   : > { %s973_s16 = scalar_lea.hbm %s1473_s0, 512  ;;  %p974_p7 = scmp.lt.u32.totalorder %s1206_s19, %s1473_s0 }
  0x34   : > { %p971_p3 = pnand %p970_p0, %p969_p13  ;;  %p975_p9 = scmp.lt.u32.totalorder %s973_s16, %s968_s26 }
  0x35   : > { %p977_p2 = scmp.lt.u32.totalorder %s968_s26, %s1206_s19 }
  0x36   : > { %p972_p5 = pneg %p971_p3  ;;  %p976_p11 = por %p975_p9, %p974_p7 }
  0x38   : > { %p978_p1 = por %p977_p2, %p976_p11 }
  0x3a   : > { %p979_p4 = pnand %p978_p1, %p972_p5 }
  0x3c   : > { %982 = shalt.err (!%p979_p4)
}
  0x3d   : > { %s983_s15 = scalar_lea.vmem %s1212_s10, 128  ;;  %s1073_s18 = smov [#allocation2]  }
  0x3e   : > { %p984_p6 = scmp.ne.s32.totalorder %s1212_s10, %s983_s15  ;;  %s988_s7 = sshll.u32 %s1073_s18, 4  ;;  %s989_s7 = int_to_ptr.vmem [resolvable:$false] %s988_s7 }
  0x3f   : > { %s990_s30 = scalar_lea.vmem %s989_s7, 256  ;;  %p991_p3 = scmp.lt.s32.totalorder %s1212_s10, %s989_s7 }
  0x40   : > { %p986_p8 = pnand %p984_p6, %p970_p0  ;;  %p992_p7 = scmp.lt.s32.totalorder %s990_s30, %s983_s15 }
  0x42   : > { %p987_p13 = pneg %p986_p8  ;;  %p993_p9 = por %p992_p7, %p991_p3 }
  0x44   : > { %p994_p11 = pnand %p993_p9, %p987_p13 }
  0x46   : > { %997 = shalt.err (!%p994_p11)
}
  0x47   : > { %892 = dma.hbm_to_vmem [thread:$0]  (!%p1208_p10), %s1206_s19, 128, %s1212_s10, %s227_s20  }
  0x48   : > { %p1490_p5 = scmp.ne.s32.totalorder %s1485_s29, 0 }
  0x49   : > { %s1242_s26 = sand.u32 (!%p1490_p5), 1, %s1060_s22   ;;  %p1491_p0 = scmp.ne.s32.totalorder (!%p1490_p5), %s1483_s27, 0 }
  0x4a   : > { %246 = sbr.rel (%p1490_p5) target bundleno = 2980 (0xba4), region = 40  ;;  %s847_s12 = sshll.u32 (!%p1490_p5), %s1242_s26, 3 }
  0x4b   : > { %s249_s16 = scalar_lea.sflag (!%p1490_p5), [#allocation3], %s1242_s26  ;;  %s252_s17 = scalar_lea.vmem (!%p1490_p5), [#allocation2], %s847_s12 }
  0x51   : > { %1043 = dma.done.wait (%p1491_p0), %s249_s16, 128  }
  0x52   : > { %1045 = vsyncadd (%p1491_p0), %s249_s16, 4294967168  ;;  %p1492_p2 = scmp.eq.s32.totalorder %s1135_s25, 0 }
  0x54   : > { %1047 = dma.done.wait (%p1492_p2), [#allocation6], 512   ;;  %p1493_p10 = pmov %p1492_p2 }
  0x55   : > { %v1074_v0 = vmov 0.0|0.0   ;;  %vm1075_vm0 = vmmov 0   ;;  %v1076_v1 = vmov 0.0   ;;  %v291_v2 = vld [vmem:[#allocation5] sm:$0xff]  ;;  %v292_v3 = vld [vmem:[#allocation5 + $0x8] sm:$0xff]  ;;  %v293_v4 = vld [vmem:[#allocation5 + $0x10] sm:$0xff]  ;;  %v377_v9 = vlaneseq }
  0x56   : > { %1049 = vsyncadd (%p1493_p10), [#allocation6], 4294966784  ;;  %871 = vmatprep.subr.bf16.mxu0 %v1074_v0  ;;  %868 = vmatprep.mubr.msk.f32.mxu0 %vm1075_vm0, %v1076_v1  ;;  %v872_v5 = vpack.c.bf16 %v292_v3, %v291_v2  ;;  %v294_v6 = vld [vmem:[#allocation5 + $0x18] sm:$0xff]  ;;  %vm302_vm1 = vcmask 261120   ;;  %v1260_v11 = vld [vmem:[%s1476_s3] sm:$0xff]  ;;  %v1077_v12 = vmov -10000.0  }
  0x57   : > { %v875_v7 = vpack.c.bf16 %v294_v6, %v293_v4  ;;  %v290_v8 = vld [vmem:[%s252_s17] sm:$0xff]  ;;  %v1254_v10 = vshrl.u32 %v377_v9, 7  ;;  %v1266_v23 = vand.u32 127, %v377_v9  ;;  %vm582_vm11 = vcmask 1047559   ;;  %p287_p1 = scmp.lt.s32.totalorder %s1135_s25, 3  ;;  %s852_s30 = sshll.u32 %s1135_s25, 4 }
  0x58   : > { %873 = vmatpush3.bf16.msra.mxu0 %v872_v5  ;;  %v849_v20 = vld [vmem:[%s1475_s2] ss:$0 sm:$0xff]  ;;  %s286_s12 = scalar_lea.vmem [#allocation7], %s1242_s26  ;;  %s1430_s29 = scalar_lea.hbm %s1479_s6, %s852_s30 }
  0x59   : > { %874 = vmatprep.subr.bf16.mxu0 %v1074_v0  ;;  %vm382_vm2 = vcmp.eq.s32.totalorder %v1254_v10, 5  ;;  %v394_v26 = vsub.s32 0, %v1254_v10  ;;  %vm1274_vm3 = vcmp.eq.s32.totalorder %v1254_v10, %v1266_v23  ;;  %v420_v39 = vsub.s32 1, %v1254_v10  ;;  %s288_s8 = scalar_select %p287_p1, %s1135_s25, 3 }
  0x5a   : > { %v383_v13 = vsel %vm382_vm2, 0.0, %v1077_v12  ;;  %v446_v51 = vsub.s32 2, %v1254_v10  ;;  %v472_v63 = vsub.s32 3, %v1254_v10  ;;  %s745_s16 = sshll.u32 %s286_s12, 4  ;;  %s730_s19 = scalar_lea.sflag [#allocation4], %s1242_s26  ;;  %s1432_s16 = int_to_ptr.vmem [resolvable:$true] %s745_s16 }
  0x5b   : > { %v384_v14 = vadd.f32 %v383_v13, %v1260_v11  ;;  %v498_v13 = vsub.s32 4, %v1254_v10  ;;  %s289_s7 = scalar_lea.vmem %s1478_s5, %s288_s8  ;;  %s998_s10 = scalar_lea.vmem %s1432_s16, 16 }
  0x5c   : > { %876 = vmatpush3.bf16.msra.mxu0 %v875_v7  ;;  %p999_p4 = scmp.ne.s32.totalorder %s1432_s16, %s998_s10  ;;  %s1078_s25 = smov [#allocation7]  }
  0x5d   : > { %v385_v15 = vrot.slane %v384_v14, 4  ;;  %s1002_s11 = sshll.u32 %s1078_s25, 4  ;;  %s1003_s11 = int_to_ptr.vmem [resolvable:$false] %s1002_s11 }
  0x5e   : > { %p1000_p6 = pnand %p999_p4, %p1197_p12  ;;  %s1004_s20 = scalar_lea.vmem %s1003_s11, 32 }
  0x5f   : > { %869 = vmatmul.mubr.msk.f32.vlgmr.msra.gmra.mrb[0].mxu0 %vm302_vm1, %v290_v8  ;;  %v386_v16 = vmax.f32 %v384_v14, %v385_v15  ;;  %p1005_p13 = scmp.lt.s32.totalorder %s1432_s16, %s1003_s11  ;;  %p1006_p3 = scmp.lt.s32.totalorder %s1004_s20, %s998_s10 }
  0x60   : > { %p1001_p8 = pneg %p1000_p6 }
  0x61   : > { %v387_v17 = vrot.slane %v386_v16, 2  ;;  %p1007_p7 = por %p1006_p3, %p1005_p13 }
  0x63   : > { %v388_v18 = vmax.f32 %v386_v16, %v387_v17  ;;  %p1008_p9 = pnand %p1007_p7, %p1001_p8 }
  0x65   : > { %v389_v19 = vrot.slane %v388_v18, 1 }
  0x67   : > { %v390_v21 = vmax.f32 %v388_v18, %v389_v19 }
 0x132   : > { %v372_v22 = vpop.f32.mrb[0].mxu0 }
 0x133   : > { %v1268_v24 = vadd.f32 %v849_v20, %v372_v22  ;;  %v870_v25 = vpop.f32.mrb[1].mxu0 }
 0x135   : > { %v391_v27 = vadd.f32 %v390_v21, %v1268_v24 }
 0x137   : > { %v395_v29 = vrot.slane %v391_v27, %v394_v26  ;;  %v524_v27 = vsub.s32 5, %v1254_v10 }
 0x139   : > { %v396_v30 = vsel %vm1274_vm3, %v395_v29, 0.0 }
 0x13a   : > { %397 = vadd.xlane.f32.xlu0 %v396_v30 }
 0x1c7   : > { %v398_v31 = vpop.xlane.xlu0 %397 }
 0x1c8   : > { %v1281_v32 = vadd.f32 %v398_v31, %v1260_v11 }
 0x1ca   : > { %v400_v33 = vrot.slane %v1281_v32, 4 }
 0x1cc   : > { %v401_v34 = vmax.f32 %v1281_v32, %v400_v33 }
 0x1ce   : > { %v402_v35 = vrot.slane %v401_v34, 2 }
 0x1d0   : > { %v403_v36 = vmax.f32 %v401_v34, %v402_v35 }
 0x1d2   : > { %v404_v37 = vrot.slane %v403_v36, 1 }
 0x1d4   : > { %v1285_v38 = vmax.f32 %v403_v36, %v404_v37 }
 0x1d6   : > { %vm406_vm4 = vcmp.eq.f32.partialorder %v1281_v32, %v1285_v38  ;;  %v417_v40 = vadd.f32 %v1285_v38, %v1268_v24 }
 0x1d8   : > { %v421_v41 = vrot.slane %v417_v40, %v420_v39 }
 0x1da   : > { %v422_v42 = vsel %vm1274_vm3, %v421_v41, 0.0 }
 0x1db   : > { %423 = vadd.xlane.f32.xlu0 %v422_v42  ;;  %v550_v42 = vsub.s32 6, %v1254_v10 }
 0x268   : > { %v424_v43 = vpop.xlane.xlu0 %423 }
 0x269   : > { %v1295_v44 = vadd.f32 %v424_v43, %v1260_v11 }
 0x26b   : > { %v426_v45 = vrot.slane %v1295_v44, 4 }
 0x26d   : > { %v427_v46 = vmax.f32 %v1295_v44, %v426_v45 }
 0x26f   : > { %v428_v47 = vrot.slane %v427_v46, 2 }
 0x271   : > { %v429_v48 = vmax.f32 %v427_v46, %v428_v47 }
 0x273   : > { %v430_v49 = vrot.slane %v429_v48, 1 }
 0x275   : > { %v1299_v50 = vmax.f32 %v429_v48, %v430_v49 }
 0x277   : > { %vm432_vm5 = vcmp.eq.f32.partialorder %v1295_v44, %v1299_v50  ;;  %v443_v52 = vadd.f32 %v1299_v50, %v1268_v24 }
 0x279   : > { %v447_v53 = vrot.slane %v443_v52, %v446_v51 }
 0x27b   : > { %v448_v54 = vsel %vm1274_vm3, %v447_v53, 0.0 }
 0x27c   : > { %449 = vadd.xlane.f32.xlu1 %v448_v54 }
 0x309   : > { %v450_v55 = vpop.xlane.xlu1 %449 }
 0x30a   : > { %v1309_v56 = vadd.f32 %v450_v55, %v1260_v11 }
 0x30c   : > { %v452_v57 = vrot.slane %v1309_v56, 4 }
 0x30e   : > { %v453_v58 = vmax.f32 %v1309_v56, %v452_v57  ;;  %v851_v57 = vld [vmem:[%s1477_s4] ss:$0 sm:$0xff] }
 0x310   : > { %v454_v59 = vrot.slane %v453_v58, 2 }
 0x312   : > { %v455_v60 = vmax.f32 %v453_v58, %v454_v59 }
 0x314   : > { %v456_v61 = vrot.slane %v455_v60, 1 }
 0x316   : > { %v1313_v62 = vmax.f32 %v455_v60, %v456_v61 }
 0x318   : > { %vm458_vm6 = vcmp.eq.f32.partialorder %v1309_v56, %v1313_v62  ;;  %v469_v0 = vadd.f32 %v1313_v62, %v1268_v24 }
 0x31a   : > { %v473_v1 = vrot.slane %v469_v0, %v472_v63 }
 0x31c   : > { %v474_v2 = vsel %vm1274_vm3, %v473_v1, 0.0 }
 0x31d   : > { %475 = vadd.xlane.f32.xlu1 %v474_v2 }
 0x3aa   : > { %v476_v3 = vpop.xlane.xlu1 %475 }
 0x3ab   : > { %v1323_v4 = vadd.f32 %v476_v3, %v1260_v11 }
 0x3ad   : > { %v478_v5 = vrot.slane %v1323_v4, 4 }
 0x3af   : > { %v479_v6 = vmax.f32 %v1323_v4, %v478_v5 }
 0x3b1   : > { %v480_v7 = vrot.slane %v479_v6, 2 }
 0x3b3   : > { %v481_v8 = vmax.f32 %v479_v6, %v480_v7 }
 0x3b5   : > { %v482_v9 = vrot.slane %v481_v8, 1 }
 0x3b7   : > { %v1327_v12 = vmax.f32 %v481_v8, %v482_v9 }
 0x3b9   : > { %vm484_vm7 = vcmp.eq.f32.partialorder %v1323_v4, %v1327_v12  ;;  %v495_v14 = vadd.f32 %v1327_v12, %v1268_v24 }
 0x3bb   : > { %v499_v15 = vrot.slane %v495_v14, %v498_v13 }
 0x3bd   : > { %v500_v16 = vsel %vm1274_vm3, %v499_v15, 0.0 }
 0x3be   : > { %501 = vadd.xlane.f32.xlu0 %v500_v16 }
 0x44b   : > { %v502_v17 = vpop.xlane.xlu0 %501 }
 0x44c   : > { %v1337_v18 = vadd.f32 %v502_v17, %v1260_v11 }
 0x44e   : > { %v504_v19 = vrot.slane %v1337_v18, 4 }
 0x450   : > { %v505_v20 = vmax.f32 %v1337_v18, %v504_v19 }
 0x452   : > { %v506_v21 = vrot.slane %v505_v20, 2 }
 0x454   : > { %v507_v22 = vmax.f32 %v505_v20, %v506_v21 }
 0x456   : > { %v508_v25 = vrot.slane %v507_v22, 1 }
 0x458   : > { %v1341_v26 = vmax.f32 %v507_v22, %v508_v25 }
 0x45a   : > { %vm510_vm8 = vcmp.eq.f32.partialorder %v1337_v18, %v1341_v26  ;;  %v521_v29 = vadd.f32 %v1341_v26, %v1268_v24 }
 0x45c   : > { %v525_v30 = vrot.slane %v521_v29, %v524_v27 }
 0x45e   : > { %v526_v31 = vsel %vm1274_vm3, %v525_v30, 0.0 }
 0x45f   : > { %527 = vadd.xlane.f32.xlu1 %v526_v31 }
 0x4ec   : > { %v528_v33 = vpop.xlane.xlu1 %527 }
 0x4ed   : > { %v1351_v34 = vadd.f32 %v528_v33, %v1260_v11 }
 0x4ef   : > { %v530_v35 = vrot.slane %v1351_v34, 4 }
 0x4f1   : > { %v531_v36 = vmax.f32 %v1351_v34, %v530_v35 }
 0x4f3   : > { %v532_v37 = vrot.slane %v531_v36, 2 }
 0x4f5   : > { %v533_v39 = vmax.f32 %v531_v36, %v532_v37 }
 0x4f7   : > { %v534_v40 = vrot.slane %v533_v39, 1 }
 0x4f9   : > { %v1355_v41 = vmax.f32 %v533_v39, %v534_v40 }
 0x4fb   : > { %vm536_vm9 = vcmp.eq.f32.partialorder %v1351_v34, %v1355_v41  ;;  %v547_v43 = vadd.f32 %v1355_v41, %v1268_v24 }
 0x4fc   : > { %v537_v31 = vsel %vm536_vm9, %v1254_v10, 8 }
 0x4fd   : > { %v551_v45 = vrot.slane %v547_v43, %v550_v42  ;;  %v538_v33 = vrot.slane %v537_v31, 4 }
 0x4ff   : > { %v552_v46 = vsel %vm1274_vm3, %v551_v45, 0.0  ;;  %vm539_vm2 = vcmp.lt.s32.totalorder %v537_v31, %v538_v33 }
 0x500   : > { %553 = vadd.xlane.f32.xlu0 %v552_v46  ;;  %v540_v35 = vsel %vm539_vm2, %v537_v31, %v538_v33 }
 0x501   : > { %v541_v36 = vrot.slane %v540_v35, 2 }
 0x503   : > { %vm542_vm3 = vcmp.lt.s32.totalorder %v540_v35, %v541_v36 }
 0x504   : > { %v543_v37 = vsel %vm542_vm3, %v540_v35, %v541_v36 }
 0x505   : > { %v544_v42 = vrot.slane %v543_v37, 1 }
 0x58d   : > { %v554_v47 = vpop.xlane.xlu0 %553 }
 0x58e   : > { %v555_v48 = vadd.f32 %v554_v47, %v1260_v11 }
 0x590   : > { %v556_v49 = vrot.slane %v555_v48, 4 }
 0x592   : > { %v557_v51 = vmax.f32 %v555_v48, %v556_v49 }
 0x594   : > { %v558_v52 = vrot.slane %v557_v51, 2 }
 0x596   : > { %v559_v53 = vmax.f32 %v557_v51, %v558_v52 }
 0x598   : > { %v560_v54 = vrot.slane %v559_v53, 1 }
 0x59a   : > { %v561_v55 = vmax.f32 %v559_v53, %v560_v54 }
 0x59c   : > { %vm562_vm10 = vcmp.eq.f32.partialorder %v555_v48, %v561_v55  ;;  %v573_v28 = vadd.f32 %v561_v55, %v1268_v24 }
 0x59d   : > { %v563_v5 = vsel %vm562_vm10, %v1254_v10, 8  ;;  %vm603_vm10 = vcmp.eq.s32.totalorder %v1266_v23, 7 }
 0x59e   : > { %v581_v58 = vadd.f32 %v851_v57, %v573_v28  ;;  %v564_v6 = vrot.slane %v563_v5, 4  ;;  %v511_v57 = vsel %vm510_vm8, %v1254_v10, 8 }
 0x59f   : > { %v512_v28 = vrot.slane %v511_v57, 4 }
 0x5a0   : > { %v583_v59 = vsel %vm582_vm11, %v581_v58, -inf  ;;  %vm565_vm14 = vcmp.lt.s32.totalorder %v563_v5, %v564_v6 }
 0x5a1   : > { %584 = vmax.xlane.f32.xlu1 %v583_v59  ;;  %v566_v7 = vsel %vm565_vm14, %v563_v5, %v564_v6  ;;  %vm513_vm14 = vcmp.lt.s32.totalorder %v511_v57, %v512_v28 }
 0x5a2   : > { %v567_v8 = vrot.slane %v566_v7, 2 }
 0x5a4   : > { %vm568_vm15 = vcmp.lt.s32.totalorder %v566_v7, %v567_v8 }
 0x5a5   : > { %v569_v9 = vsel %vm568_vm15, %v566_v7, %v567_v8 }
 0x5a6   : > { %v570_v14 = vrot.slane %v569_v9, 1 }
 0x5a8   : > { %vm571_vm0 = vcmp.lt.s32.totalorder %v569_v9, %v570_v14 }
 0x5a9   : > { %v572_v20 = vsel %vm571_vm0, %v569_v9, %v570_v14  ;;  %vm637_vm0 = vcmp.eq.s32.totalorder %v1266_v23, 5 }
 0x62e   : > { %v585_v11 = vpop.xlane.xlu1 %584 }
 0x62f   : > { %vm586_vm12 = vcmp.eq.f32.partialorder %v581_v58, %v585_v11  ;;  %724 = vst [vmem:[%s289_s7 - $0x7] sm:$0x80] %v585_v11  ;;  %v514_v58 = vsel %vm513_vm14, %v511_v57, %v512_v28  ;;  %vm671_vm14 = vcmp.eq.s32.totalorder %v1266_v23, 3 }
 0x630   : > { %v587_v60 = vsel %vm586_vm12, %v1266_v23, 128  ;;  %vm620_vm12 = vcmp.eq.s32.totalorder %v1266_v23, 6  ;;  %v515_v59 = vrot.slane %v514_v58, 2 }
 0x631   : > { %v588_v61 = vsel %vm582_vm11, %v587_v60, 2147483647 }
 0x632   : > { %v590_v63 = vshra.s32 %v588_v61, 16  ;;  %v589_v0 = vand.u32 65535, %v588_v61  ;;  %vm516_vm15 = vcmp.lt.s32.totalorder %v514_v58, %v515_v59 }
 0x633   : > { %v517_v11 = vsel %vm516_vm15, %v514_v58, %v515_v59  ;;  %v433_v58 = vsel %vm432_vm5, %v1254_v10, 8 }
 0x634   : > { %v592_v24 = vcvt.s32.f32 %v590_v63  ;;  %v591_v2 = vcvt.s32.f32 %v589_v0  ;;  %v518_v63 = vrot.slane %v517_v11, 1  ;;  %v434_v59 = vrot.slane %v433_v58, 4 }
 0x636   : > { %593 = vmin.xlane.f32.xlu0 %v592_v24 }
 0x6c3   : > { %v594_v1 = vpop.xlane.xlu0 %593 }
 0x6c4   : > { %vm595_vm13 = vcmp.eq.f32.partialorder %v592_v24, %v594_v1  ;;  %v600_v13 = vcvt.f32.s32 %v594_v1 }
 0x6c5   : > { %v596_v3 = vsel %vm595_vm13, %v591_v2, inf  ;;  %vm545_vm13 = vcmp.lt.s32.totalorder %v543_v37, %v544_v42 }
 0x6c6   : > { %597 = vmin.xlane.f32.xlu1 %v596_v3  ;;  %v601_v16 = vshll.u32 %v600_v13, 16  ;;  %v546_v48 = vsel %vm545_vm13, %v543_v37, %v544_v42  ;;  %v485_v13 = vsel %vm484_vm7, %v1254_v10, 8 }
 0x6c7   : > { %v486_v14 = vrot.slane %v485_v13, 4 }
 0x6c9   : > { %vm487_vm8 = vcmp.lt.s32.totalorder %v485_v13, %v486_v14 }
 0x753   : > { %v598_v15 = vpop.xlane.xlu1 %597 }
 0x754   : > { %v599_v17 = vcvt.f32.s32 %v598_v15  ;;  %v488_v15 = vsel %vm487_vm8, %v485_v13, %v486_v14  ;;  %v407_v13 = vsel %vm406_vm4, %v1254_v10, 8 }
 0x755   : > { %v408_v14 = vrot.slane %v407_v13, 4 }
 0x756   : > { %v602_v19 = vadd.s32 %v601_v16, %v599_v17  ;;  %v489_v16 = vrot.slane %v488_v15, 2 }
 0x757   : > { %vm409_vm5 = vcmp.lt.s32.totalorder %v407_v13, %v408_v14 }
 0x758   : > { %vm605_vm1 = vcmp.eq.s32.totalorder %v1266_v23, %v602_v19  ;;  %v604_v34 = vsel %vm603_vm10, %v602_v19, 0  ;;  %vm490_vm3 = vcmp.lt.s32.totalorder %v488_v15, %v489_v16  ;;  %vm654_vm10 = vcmp.eq.s32.totalorder %v1266_v23, 4 }
 0x759   : > { %v606_v21 = vsel %vm605_vm1, %v572_v20, 0  ;;  %vm519_vm1 = vcmp.lt.s32.totalorder %v517_v11, %v518_v63  ;;  %v491_v17 = vsel %vm490_vm3, %v488_v15, %v489_v16  ;;  %v410_v15 = vsel %vm409_vm5, %v407_v13, %v408_v14 }
 0x75a   : > { %v607_v22 = vsel %vm582_vm11, %v606_v21, 0  ;;  %v520_v18 = vsel %vm519_vm1, %v517_v11, %v518_v63  ;;  %v492_v21 = vrot.slane %v491_v17, 1  ;;  %v411_v16 = vrot.slane %v410_v15, 2 }
 0x75b   : > { %v609_v25 = vshrl.u32 %v607_v22, 16  ;;  %v608_v27 = vand.u32 65535, %v607_v22 }
 0x75d   : > { %v611_v29 = vcvt.s32.f32 %v609_v25  ;;  %v610_v30 = vcvt.s32.f32 %v608_v27 }
 0x75f   : > { %614 = vadd.xlane.f32.xlu0 %v611_v29  ;;  %612 = vadd.xlane.f32.xlu1 %v610_v30 }
 0x7ec   : > { %v615_v39 = vpop.xlane.xlu0 %614  ;;  %v613_v40 = vpop.xlane.xlu1 %612 }
 0x7ed   : > { %v617_v43 = vcvt.f32.s32 %v615_v39  ;;  %v616_v46 = vcvt.f32.s32 %v613_v40  ;;  %v459_v39 = vsel %vm458_vm6, %v1254_v10, 8  ;;  %vm435_vm6 = vcmp.lt.s32.totalorder %v433_v58, %v434_v59 }
 0x7ee   : > { %v460_v40 = vrot.slane %v459_v39, 4  ;;  %v436_v11 = vsel %vm435_vm6, %v433_v58, %v434_v59 }
 0x7ef   : > { %v618_v45 = vshll.u32 %v617_v43, 16 }
 0x7f0   : > { %vm461_vm7 = vcmp.lt.s32.totalorder %v459_v39, %v460_v40 }
 0x7f1   : > { %v619_v47 = vadd.s32 %v618_v45, %v616_v46  ;;  %v462_v42 = vsel %vm461_vm7, %v459_v39, %v460_v40  ;;  %vm722_vm7 = vcmp.eq.s32.totalorder %v1266_v23, 0 }
 0x7f2   : > { %v463_v43 = vrot.slane %v462_v42, 2 }
 0x7f3   : > { %v621_v41 = vsel %vm620_vm12, %v619_v47, %v604_v34  ;;  %vm622_vm9 = vcmp.eq.s32.totalorder %v1266_v23, %v619_v47  ;;  %vm493_vm12 = vcmp.lt.s32.totalorder %v491_v17, %v492_v21 }
 0x7f4   : > { %v623_v49 = vsel %vm622_vm9, %v546_v48, 0  ;;  %v494_v4 = vsel %vm493_vm12, %v491_v17, %v492_v21  ;;  %vm464_vm9 = vcmp.lt.s32.totalorder %v462_v42, %v463_v43  ;;  %vm705_vm12 = vcmp.eq.s32.totalorder %v1266_v23, 1 }
 0x7f5   : > { %v624_v51 = vsel %vm582_vm11, %v623_v49, 0  ;;  %v465_v45 = vsel %vm464_vm9, %v462_v42, %v463_v43 }
 0x7f6   : > { %v626_v52 = vshrl.u32 %v624_v51, 16  ;;  %v625_v53 = vand.u32 65535, %v624_v51  ;;  %v466_v34 = vrot.slane %v465_v45, 1 }
 0x7f8   : > { %v628_v54 = vcvt.s32.f32 %v626_v52  ;;  %v627_v55 = vcvt.s32.f32 %v625_v53  ;;  %vm467_vm15 = vcmp.lt.s32.totalorder %v465_v45, %v466_v34 }
 0x7f9   : > { %v468_v56 = vsel %vm467_vm15, %v465_v45, %v466_v34 }
 0x7fa   : > { %631 = vadd.xlane.f32.xlu0 %v628_v54  ;;  %629 = vadd.xlane.f32.xlu1 %v627_v55 }
 0x887   : > { %v632_v60 = vpop.xlane.xlu0 %631  ;;  %v630_v61 = vpop.xlane.xlu1 %629 }
 0x888   : > { %v634_v24 = vcvt.f32.s32 %v632_v60  ;;  %v633_v1 = vcvt.f32.s32 %v630_v61  ;;  %v437_v60 = vrot.slane %v436_v11, 2 }
 0x88a   : > { %v635_v0 = vshll.u32 %v634_v24, 16  ;;  %vm438_vm1 = vcmp.lt.s32.totalorder %v436_v11, %v437_v60 }
 0x88b   : > { %v439_v61 = vsel %vm438_vm1, %v436_v11, %v437_v60 }
 0x88c   : > { %v636_v2 = vadd.s32 %v635_v0, %v633_v1  ;;  %v440_v0 = vrot.slane %v439_v61, 1 }
 0x88e   : > { %v638_v3 = vsel %vm637_vm0, %v636_v2, %v621_v41  ;;  %vm639_vm2 = vcmp.eq.s32.totalorder %v1266_v23, %v636_v2  ;;  %vm441_vm8 = vcmp.lt.s32.totalorder %v439_v61, %v440_v0 }
 0x88f   : > { %v640_v26 = vsel %vm639_vm2, %v520_v18, 0  ;;  %vm688_vm2 = vcmp.eq.s32.totalorder %v1266_v23, 2  ;;  %v442_v44 = vsel %vm441_vm8, %v439_v61, %v440_v0 }
 0x890   : > { %v641_v5 = vsel %vm582_vm11, %v640_v26, 0 }
 0x891   : > { %v643_v6 = vshrl.u32 %v641_v5, 16  ;;  %v642_v7 = vand.u32 65535, %v641_v5 }
 0x893   : > { %v645_v8 = vcvt.s32.f32 %v643_v6  ;;  %v644_v9 = vcvt.s32.f32 %v642_v7 }
 0x895   : > { %648 = vadd.xlane.f32.xlu0 %v645_v8  ;;  %646 = vadd.xlane.f32.xlu1 %v644_v9 }
 0x922   : > { %v649_v19 = vpop.xlane.xlu0 %648  ;;  %v647_v20 = vpop.xlane.xlu1 %646 }
 0x923   : > { %v651_v22 = vcvt.f32.s32 %v649_v19  ;;  %v650_v27 = vcvt.f32.s32 %v647_v20 }
 0x925   : > { %v652_v25 = vshll.u32 %v651_v22, 16 }
 0x927   : > { %v653_v29 = vadd.s32 %v652_v25, %v650_v27 }
 0x929   : > { %v655_v30 = vsel %vm654_vm10, %v653_v29, %v638_v3  ;;  %vm656_vm13 = vcmp.eq.s32.totalorder %v1266_v23, %v653_v29  ;;  %vm412_vm10 = vcmp.lt.s32.totalorder %v410_v15, %v411_v16 }
 0x92a   : > { %v657_v12 = vsel %vm656_vm13, %v494_v4, 0  ;;  %v413_v17 = vsel %vm412_vm10, %v410_v15, %v411_v16 }
 0x92b   : > { %v658_v31 = vsel %vm582_vm11, %v657_v12, 0  ;;  %v414_v21 = vrot.slane %v413_v17, 1 }
 0x92c   : > { %v660_v33 = vshrl.u32 %v658_v31, 16  ;;  %v659_v35 = vand.u32 65535, %v658_v31 }
 0x92d   : > { %vm415_vm13 = vcmp.lt.s32.totalorder %v413_v17, %v414_v21 }
 0x92e   : > { %v662_v36 = vcvt.s32.f32 %v660_v33  ;;  %v661_v37 = vcvt.s32.f32 %v659_v35  ;;  %v416_v10 = vsel %vm415_vm13, %v413_v17, %v414_v21 }
 0x930   : > { %665 = vadd.xlane.f32.xlu0 %v662_v36  ;;  %663 = vadd.xlane.f32.xlu1 %v661_v37 }
 0x9bd   : > { %v666_v46 = vpop.xlane.xlu0 %665  ;;  %v664_v47 = vpop.xlane.xlu1 %663 }
 0x9be   : > { %v668_v41 = vcvt.f32.s32 %v666_v46  ;;  %v667_v49 = vcvt.f32.s32 %v664_v47 }
 0x9c0   : > { %v669_v48 = vshll.u32 %v668_v41, 16 }
 0x9c2   : > { %v670_v51 = vadd.s32 %v669_v48, %v667_v49 }
 0x9c4   : > { %v672_v52 = vsel %vm671_vm14, %v670_v51, %v655_v30  ;;  %vm673_vm0 = vcmp.eq.s32.totalorder %v1266_v23, %v670_v51 }
 0x9c5   : > { %v674_v62 = vsel %vm673_vm0, %v468_v56, 0 }
 0x9c6   : > { %v675_v53 = vsel %vm582_vm11, %v674_v62, 0 }
 0x9c7   : > { %v677_v54 = vshrl.u32 %v675_v53, 16  ;;  %v676_v55 = vand.u32 65535, %v675_v53 }
 0x9c9   : > { %v679_v57 = vcvt.s32.f32 %v677_v54  ;;  %v678_v28 = vcvt.s32.f32 %v676_v55 }
 0x9cb   : > { %682 = vadd.xlane.f32.xlu0 %v679_v57  ;;  %680 = vadd.xlane.f32.xlu1 %v678_v28 }
 0xa58   : > { %v683_v63 = vpop.xlane.xlu0 %682  ;;  %v681_v24 = vpop.xlane.xlu1 %680 }
 0xa59   : > { %v685_v1 = vcvt.f32.s32 %v683_v63  ;;  %v684_v3 = vcvt.f32.s32 %v681_v24 }
 0xa5b   : > { %v686_v2 = vshll.u32 %v685_v1, 16 }
 0xa5d   : > { %v687_v18 = vadd.s32 %v686_v2, %v684_v3 }
 0xa5f   : > { %v689_v26 = vsel %vm688_vm2, %v687_v18, %v672_v52  ;;  %vm690_vm3 = vcmp.eq.s32.totalorder %v1266_v23, %v687_v18 }
 0xa60   : > { %v691_v50 = vsel %vm690_vm3, %v442_v44, 0 }
 0xa61   : > { %v692_v5 = vsel %vm582_vm11, %v691_v50, 0 }
 0xa62   : > { %v694_v6 = vshrl.u32 %v692_v5, 16  ;;  %v693_v7 = vand.u32 65535, %v692_v5 }
 0xa64   : > { %v696_v8 = vcvt.s32.f32 %v694_v6  ;;  %v695_v9 = vcvt.s32.f32 %v693_v7 }
 0xa66   : > { %699 = vadd.xlane.f32.xlu0 %v696_v8  ;;  %697 = vadd.xlane.f32.xlu1 %v695_v9 }
 0xaf3   : > { %v700_v19 = vpop.xlane.xlu0 %699  ;;  %v698_v20 = vpop.xlane.xlu1 %697 }
 0xaf4   : > { %v702_v22 = vcvt.f32.s32 %v700_v19  ;;  %v701_v27 = vcvt.f32.s32 %v698_v20 }
 0xaf6   : > { %v703_v25 = vshll.u32 %v702_v22, 16 }
 0xaf8   : > { %v704_v29 = vadd.s32 %v703_v25, %v701_v27 }
 0xafa   : > { %v706_v30 = vsel %vm705_vm12, %v704_v29, %v689_v26  ;;  %vm707_vm4 = vcmp.eq.s32.totalorder %v1266_v23, %v704_v29 }
 0xafb   : > { %v708_v32 = vsel %vm707_vm4, %v416_v10, 0 }
 0xafc   : > { %v709_v38 = vsel %vm582_vm11, %v708_v32, 0 }
 0xafd   : > { %v711_v4 = vshrl.u32 %v709_v38, 16  ;;  %v710_v12 = vand.u32 65535, %v709_v38 }
 0xaff   : > { %v713_v31 = vcvt.s32.f32 %v711_v4  ;;  %v712_v33 = vcvt.s32.f32 %v710_v12 }
 0xb01   : > { %716 = vadd.xlane.f32.xlu0 %v713_v31  ;;  %714 = vadd.xlane.f32.xlu1 %v712_v33 }
 0xb8e   : > { %v717_v35 = vpop.xlane.xlu0 %716  ;;  %v715_v36 = vpop.xlane.xlu1 %714 }
 0xb8f   : > { %v719_v37 = vcvt.f32.s32 %v717_v35  ;;  %v718_v40 = vcvt.f32.s32 %v715_v36 }
 0xb91   : > { %v720_v39 = vshll.u32 %v719_v37, 16 }
 0xb93   : > { %v721_v42 = vadd.s32 %v720_v39, %v718_v40 }
 0xb95   : > { %v723_v43 = vsel %vm722_vm7, %v721_v42, %v706_v30 }
 0xb96   : > { %725 = vst [vmem:[%s286_s12 - $0x7] sm:$0x80] %v723_v43 }
 0xb97   : > { %1011 = shalt.err (!%p1008_p9)
}
 0xb98   : > { %s1012_s26 = scalar_lea.hbm %s1430_s29, 16  ;;  %s1016_s18 = scalar_lea.hbm %s1479_s6, 64 }
 0xb99   : > { %p1013_p11 = scmp.ne.s32.totalorder %s1430_s29, %s1012_s26  ;;  %p1017_p2 = scmp.lt.u32.totalorder %s1430_s29, %s1479_s6 }
 0xb9a   : > { %p1018_p10 = scmp.lt.u32.totalorder %s1016_s18, %s1012_s26  ;;  %p1020_p4 = scmp.lt.u32.totalorder %s1012_s26, %s1430_s29 }
 0xb9b   : > { %p1014_p5 = pnand %p1013_p11, %p1197_p12 }
 0xb9c   : > { %p1019_p1 = por %p1018_p10, %p1017_p2 }
 0xb9d   : > { %p1015_p0 = pneg %p1014_p5 }
 0xb9e   : > { %p1021_p6 = por %p1020_p4, %p1019_p1 }
 0xba0   : > { %p1022_p8 = pnand %p1021_p6, %p1015_p0 }
 0xba2   : > { %1025 = shalt.err (!%p1022_p8)
}
 0xba3   : > { %883 = dma.vmem_to_hbm [thread:$0]  (%p1197_p12), %s1432_s16, 16, %s1430_s29, %s730_s19  }
 0xba4 PF: > { %p900_p13 = scmp.ge.s32.totalorder %s1068_s24, 2  ;;  %s763_s12 = sand.u32 1, %s1056_s21  }
 0xba5   : > { %p1496_p3 = scmp.ne.s32.totalorder %s1484_s28, 0  ;;  %s764_s17 = scalar_lea.sflag [#allocation4], %s763_s12 }
 0xba7   : > { %p894_p7 = pnand %p900_p13, %p1496_p3 }
 0xba9   : > { %1051 = dma.done.wait (!%p894_p7), %s764_s17, 16  }
 0xbaa   : > { %1053 = vsyncadd (!%p894_p7), %s764_s17, 4294967280  ;;  %p21_p9 = scmp.ge.s32.totalorder %s1167_s9, 6   ;;  %s1497_s21 = smov %s1060_s22 }
 0xbab   : > { %s1498_s22 = smov %s1064_s23  ;;  %s1499_s23 = smov %s1193_s13 }
 0xbac   : > { %s1500_s24 = smov %s1167_s9  ;;  %23 = sbr.rel (!%p21_p9) target bundleno = 6 (0x6), region = 101 }
 0xbb3   :  { %768 = vsyncpa [#allocation3], 1 }
 0xbb4   :  { %770 = vsyncpa [#allocation3 + $0x1], 1 }
 0xbb5   :  { %771 = vsyncpa [#allocation6], 1 }
 0xbb6   :  { %772 = vsyncpa [#allocation4], 1 }
 0xbb7   :  { %774 = vsyncpa [#allocation4 + $0x1], 1 }

</bundles_post_ra>
